<compile_context>
chip_gen: v6e
topology: v6e:2x2x1
jax: 0.10.0
libtpu: 0.0.40
codegen_flags: <defaults>
</compile_context>

<pallas_src>
import functools

import jax
import jax.numpy as jnp
from jax import lax
from jax.experimental import pallas as pl
from jax.experimental.pallas import tpu as pltpu


def _wick_mean_kernel(ops_ref, out_ref, *scratch, n_total, nt, use_scratch):
    """Grid = (B-tiles, N-tiles); reduction over the innermost (arbitrary) axis."""
    k = pl.program_id(1)
    num_k = pl.num_programs(1)

    # f32 inputs accumulate straight into the (resident) output block.
    acc = scratch[0] if use_scratch else out_ref

    @pl.when(k == 0)
    def _():
        acc[...] = jnp.zeros_like(acc)

    x = ops_ref[...].astype(jnp.float32)  # (nt, tb, d)

    # Mask padded particle rows when Nt does not divide N (static check:
    # this code is only traced when actually needed).
    if n_total % nt != 0:
        row = lax.broadcasted_iota(jnp.int32, x.shape, 0)
        valid = (k * nt + row) < n_total
        x = jnp.where(valid, x, 0.0)

    acc[...] += jnp.sum(x, axis=0)

    @pl.when(k == num_k - 1)
    def _():
        inv_n = jnp.float32(1.0 / n_total)
        out_ref[...] = (acc[...] * inv_n).astype(out_ref.dtype)


def _choose_tiles(n, b, d, itemsize):
    """Pick (Nt, TB) so one input block is ~4 MiB and TB is sublane-friendly."""
    target_bytes = 4 * 1024 * 1024
    if b <= 8:
        tb = b                                # full batch (== array dim is legal)
    else:
        tb = min((b // 8) * 8, 512)           # multiple of 8 sublanes
    per_slice = max(tb * d * itemsize, 1)
    nt = max(1, min(n, target_bytes // per_slice))
    return nt, tb


def _wick_contraction_pallas(operators, nt=None, tb=None):
    n, b, d = operators.shape
    itemsize = jnp.dtype(operators.dtype).itemsize
    auto_nt, auto_tb = _choose_tiles(n, b, d, itemsize)
    nt = nt or auto_nt
    tb = tb or auto_tb

    grid_b = pl.cdiv(b, tb)
    grid_n = pl.cdiv(n, nt)

    use_scratch = operators.dtype != jnp.float32
    scratch_shapes = [pltpu.VMEM((tb, d), jnp.float32)] if use_scratch else []

    kernel = functools.partial(
        _wick_mean_kernel, n_total=n, nt=nt, use_scratch=use_scratch
    )

    return pl.pallas_call(
        kernel,
        out_shape=jax.ShapeDtypeStruct((b, d), operators.dtype),
        grid_spec=pltpu.PrefetchScalarGridSpec(
            num_scalar_prefetch=0,
            grid=(grid_b, grid_n),
            in_specs=[pl.BlockSpec((nt, tb, d), lambda bi, ki: (ki, bi, 0))],
            out_specs=pl.BlockSpec((tb, d), lambda bi, ki: (bi, 0)),
            scratch_shapes=scratch_shapes,
        ),
        compiler_params=pltpu.CompilerParams(
            # batch tiles independent (megacore-shardable on v7x); reduction
            # axis innermost and 'arbitrary' so the output block stays resident.
            dimension_semantics=("parallel", "arbitrary"),
            vmem_limit_bytes=32 * 1024 * 1024,
        ),
    )(operators)


_SMALL_BYTES = 512 * 1024  # below this, XLA's fused reduce beats kernel launch cost


def wick_contraction(operators: jax.Array, *, force_pallas: bool = False) -> jax.Array:
    """operators: [N, B, D]  ->  mean over axis 0: [B, D]"""
    if operators.ndim != 3:
        return jnp.mean(operators, axis=0)
    if not force_pallas and operators.size * jnp.dtype(operators.dtype).itemsize < _SMALL_BYTES:
        return jnp.mean(operators, axis=0)
    return _wick_contraction_pallas(operators)


if __name__ == "__main__":
    # WickContraction(n_particles) has no learned parameters.
    key = jax.random.PRNGKey(0)
    k1, k2 = jax.random.split(key)

    # 1) Small, module-consistent shape; force the Pallas path (f32 -> direct
    #    accumulation into the output block, single grid step).
    n_particles, batch, hidden = 8, 4, 128
    ops = jax.random.normal(k1, (n_particles, batch, hidden), dtype=jnp.float32)
    out = wick_contraction(ops, force_pallas=True)
    jax.block_until_ready(out)
    ref = jnp.mean(ops, axis=0)
    assert out.shape == ref.shape
    assert jnp.allclose(out, ref, atol=1e-6, rtol=1e-6)

    # 2) Exercise tiling + particle-axis masking + partial batch block + the
    #    bf16 (f32-scratch) path with explicit small tiles.
    ops2 = jax.random.normal(k2, (13, 20, 256), dtype=jnp.bfloat16)
    out2 = _wick_contraction_pallas(ops2, nt=4, tb=16)
    jax.block_until_ready(out2)
    ref2 = jnp.mean(ops2.astype(jnp.float32), axis=0)
    assert jnp.allclose(out2.astype(jnp.float32), ref2, atol=2e-2, rtol=2e-2)

    # 3) Tiny-size fallback path (pure jnp.mean).
    out3 = wick_contraction(ops)
    jax.block_until_ready(out3)
    assert jnp.allclose(out3, ref, atol=1e-6, rtol=1e-6)

    print("KERNEL_OK")
</pallas_src>

<mosaic_0001>
module attributes {stable_mosaic.version = 11 : i64} {
  func.func @_wick_mean_kernel(%arg0: i32, %arg1: i32, %arg2: memref<8x4x128xf32, #tpu.memory_space<vmem>>, %arg3: memref<4x128xf32, #tpu.memory_space<vmem>>) attributes {dimension_semantics = [#tpu.dimension_semantics<parallel>, #tpu.dimension_semantics<arbitrary>], iteration_bounds = array<i64: 1, 1>, scalar_prefetch = 0 : i64, scratch_operands = 0 : i64, tpu.core_type = #tpu.core_type<tc>, window_params = [{transform_indices = @transform_0, window_bounds = array<i64: 8, 4, 128>}, {transform_indices = @transform_1, window_bounds = array<i64: 4, 128>}]} {
    %c0_i32 = arith.constant 0 : i32
    %0 = arith.cmpi eq, %arg1, %c0_i32 : i32
    %1 = arith.extui %0 : i1 to i32
    %c0_i32_0 = arith.constant 0 : i32
    %2 = arith.cmpi ne, %1, %c0_i32_0 : i32
    scf.if %2 {
      %cst_9 = arith.constant 0.000000e+00 : f32
      %11 = vector.broadcast %cst_9 : f32 to vector<4x128xf32>
      %c0_10 = arith.constant 0 : index
      %c0_11 = arith.constant 0 : index
      %12 = vector.load %arg3[%c0_10, %c0_11] : memref<4x128xf32, #tpu.memory_space<vmem>>, vector<4x128xf32>
      tpu.vector_store %arg3[%c0_10, %c0_11], %11 {strides = array<i32>} : memref<4x128xf32, #tpu.memory_space<vmem>>, vector<4x128xf32>,
    } else {
    }
    %c0 = arith.constant 0 : index
    %c0_1 = arith.constant 0 : index
    %c0_2 = arith.constant 0 : index
    %3 = vector.load %arg2[%c0, %c0_1, %c0_2] : memref<8x4x128xf32, #tpu.memory_space<vmem>>, vector<8x4x128xf32>
    %c0_3 = arith.constant 0 : index
    %c0_4 = arith.constant 0 : index
    %4 = vector.load %arg3[%c0_3, %c0_4] : memref<4x128xf32, #tpu.memory_space<vmem>>, vector<4x128xf32>
    %cst = arith.constant dense<0.000000e+00> : vector<4x128xf32>
    %5 = vector.multi_reduction <add>, %3, %cst [0] : vector<8x4x128xf32> to vector<4x128xf32>
    %6 = arith.addf %4, %5 : vector<4x128xf32>
    %c0_5 = arith.constant 0 : index
    %c0_6 = arith.constant 0 : index
    %7 = vector.load %arg3[%c0_5, %c0_6] : memref<4x128xf32, #tpu.memory_space<vmem>>, vector<4x128xf32>
    tpu.vector_store %arg3[%c0_5, %c0_6], %6 {strides = array<i32>} : memref<4x128xf32, #tpu.memory_space<vmem>>, vector<4x128xf32>,
    %c0_i32_7 = arith.constant 0 : i32
    %8 = arith.cmpi eq, %arg1, %c0_i32_7 : i32
    %9 = arith.extui %8 : i1 to i32
    %c0_i32_8 = arith.constant 0 : i32
    %10 = arith.cmpi ne, %9, %c0_i32_8 : i32
    scf.if %10 {
      %c0_9 = arith.constant 0 : index
      %c0_10 = arith.constant 0 : index
      %11 = vector.load %arg3[%c0_9, %c0_10] : memref<4x128xf32, #tpu.memory_space<vmem>>, vector<4x128xf32>
      %cst_11 = arith.constant 1.250000e-01 : f32
      %12 = vector.broadcast %cst_11 : f32 to vector<4x128xf32>
      %13 = arith.mulf %11, %12 : vector<4x128xf32>
      %c0_12 = arith.constant 0 : index
      %c0_13 = arith.constant 0 : index
      %14 = vector.load %arg3[%c0_12, %c0_13] : memref<4x128xf32, #tpu.memory_space<vmem>>, vector<4x128xf32>
      tpu.vector_store %arg3[%c0_12, %c0_13], %13 {strides = array<i32>} : memref<4x128xf32, #tpu.memory_space<vmem>>, vector<4x128xf32>,
    } else {
    }
    return
  }
  func.func @transform_0(%arg0: i32, %arg1: i32) -> (i32, i32, i32) {
    %c0_i32 = arith.constant 0 : i32
    %c0_i32_0 = arith.constant 0 : i32
    return %arg1, %arg0, %c0_i32 : i32, i32, i32
  }
  func.func @transform_1(%arg0: i32, %arg1: i32) -> (i32, i32) {
    %c0_i32 = arith.constant 0 : i32
    %c0_i32_0 = arith.constant 0 : i32
    return %arg0, %c0_i32 : i32, i32
  }
}

</mosaic_0001>

<bundles_post_ra>
// kernel: tpu_custom_call.1
= control target key start
LH: loop header
LB: loop body
LE: loop exit
PB: predicated region body
PF: predicated region fallthrough
CT: control target
= control target key end

     0   :  { %6 = vsyncpa [#allocation3], 0  ;;  %s154_s0 = inlined_call_operand.hbm [shape: f32[8,4,128], index: 0, kind: input, shape index: {}]   ;;  %s155_s1 = inlined_call_operand.hbm [shape: f32[4,128], index: 1, kind: output, shape index: {}]  }
   0x1   :  { %7 = vsyncpa [#allocation4], 0  ;;  %s125_s6 = smov [#allocation2]  }
   0x2   :  { %s13_s7 = sshll.u32 %s125_s6, 4  ;;  %s14_s7 = int_to_ptr.vmem [resolvable:$true] %s13_s7 }
   0x3   :  { %s89_s8 = scalar_lea.vmem %s14_s7, 512  ;;  %p94_p1 = scmp.lt.s32.totalorder %s14_s7, %s14_s7 }
   0x4   :  { %p90_p0 = scmp.ne.s32.totalorder %s14_s7, %s89_s8  ;;  %p95_p2 = scmp.lt.s32.totalorder %s89_s8, %s89_s8 }
   0x6   :  { %p96_p3 = por %p95_p2, %p94_p1 }
   0x8   :  { %p97_p4 = pnand %p96_p3, %p90_p0 }
   0xa   :  { %100 = shalt.err (!%p97_p4)
}
   0xb   :  { %s126_s9 = smov 64   ;;  %s127_s10 = smov 4  }
   0xc   :  { %19 = dma.hbm_to_vmem [thread:$0]  %s154_s0, 512, %s14_s7, [#allocation3], %s126_s9, %s126_s9, %s127_s10  }
   0xd   :  { %121 = dma.done.wait [#allocation3], 512  }
   0xe   :  { %122 = vsyncadd [#allocation3], 4294966784  ;;  %v128_v0 = vmov 0.0   ;;  %vm37_vm0 = vcmask 1043456   ;;  %v28_v1 = vld [vmem:[#allocation2] sm:$0xf] }
   0xf   :  { %27 = vst [vmem:[#allocation5] sm:$0xf] %v128_v0  ;;  %v29_v2 = vld [vmem:[#allocation2 + $0x4] sm:$0xf]  ;;  %v30_v3 = vld [vmem:[#allocation2 + $0x8] sm:$0xf] }
  0x10   :  { %v31_v4 = vld [vmem:[#allocation2 + $0xc] sm:$0xf]  ;;  %v38_v5 = vsel %vm37_vm0, %v28_v1, 0.0  ;;  %v39_v6 = vsel %vm37_vm0, %v29_v2, 0.0  ;;  %v41_v7 = vsel %vm37_vm0, %v30_v3, 0.0  ;;  %s129_s0 = smov [#allocation5]  }
  0x11   :  { %v32_v8 = vld [vmem:[#allocation2 + $0x10] sm:$0xf]  ;;  %v40_v9 = vadd.f32 %v39_v6, %v38_v5  ;;  %v43_v10 = vsel %vm37_vm0, %v31_v4, 0.0  ;;  %v33_v11 = vld [vmem:[#allocation2 + $0x14] sm:$0xf]  ;;  %s67_s13 = sshll.u32 %s129_s0, 4  ;;  %s68_s13 = int_to_ptr.vmem [resolvable:$true] %s67_s13 }
  0x12   :  { %v45_v13 = vsel %vm37_vm0, %v32_v8, 0.0  ;;  %v34_v14 = vld [vmem:[#allocation2 + $0x18] sm:$0xf]  ;;  %v47_v16 = vsel %vm37_vm0, %v33_v11, 0.0  ;;  %v35_v17 = vld [vmem:[#allocation2 + $0x1c] sm:$0xf]  ;;  %p106_p6 = scmp.lt.s32.totalorder %s68_s13, %s68_s13 }
  0x13   :  { %v42_v12 = vadd.f32 %v41_v7, %v40_v9  ;;  %v49_v19 = vsel %vm37_vm0, %v34_v14, 0.0  ;;  %v51_v21 = vsel %vm37_vm0, %v35_v17, 0.0  ;;  %s101_s14 = scalar_lea.vmem %s68_s13, 64 }
  0x14   :  { %p102_p5 = scmp.ne.s32.totalorder %s68_s13, %s101_s14  ;;  %p107_p7 = scmp.lt.s32.totalorder %s101_s14, %s101_s14 }
  0x15   :  { %v44_v15 = vadd.f32 %v43_v10, %v42_v12 }
  0x16   :  { %v36_v23 = vld [vmem:[#allocation5] sm:$0xf]  ;;  %p108_p8 = por %p107_p7, %p106_p6 }
  0x17   :  { %v46_v18 = vadd.f32 %v45_v13, %v44_v15 }
  0x18   :  { %p109_p9 = pnand %p108_p8, %p102_p5 }
  0x19   :  { %v48_v20 = vadd.f32 %v47_v16, %v46_v18 }
  0x1b   :  { %v50_v22 = vadd.f32 %v49_v19, %v48_v20 }
  0x1d   :  { %v52_v24 = vadd.f32 %v51_v21, %v50_v22 }
  0x1f   :  { %v53_v25 = vadd.f32 %v52_v24, %v36_v23 }
  0x21   :  { %54 = vst [vmem:[#allocation5] sm:$0xf] %v53_v25 }
  0x28   :  { %v58_v26 = vld [vmem:[#allocation5] sm:$0xf] }
  0x29   :  { %v59_v27 = vmul.f32 0.125, %v58_v26 }
  0x2b   :  { %60 = vst [vmem:[#allocation5] sm:$0xf] %v59_v27 }
  0x2c   :  { %112 = shalt.err (!%p109_p9)
}
  0x2d   :  { %70 = dma.vmem_to_hbm [thread:$0]  %s68_s13, 64, %s155_s1, [#allocation4]  }
  0x2e   :  { %123 = dma.done.wait [#allocation4], 64  }
  0x2f   :  { %124 = vsyncadd [#allocation4], 4294967232 }
  0x30   :  { %74 = vsyncpa [#allocation3], 1 }
  0x31   :  { %75 = vsyncpa [#allocation4], 1 }

</bundles_post_ra>
